<compile_context>
chip_gen: v6e
topology: v6e:2x2x1
jax: 0.10.0
libtpu: 0.0.40
codegen_flags: <defaults>
</compile_context>

<pallas_src>
import jax
import jax.numpy as jnp
from jax.experimental import pallas as pl
from jax.experimental.pallas import tpu as pltpu
import numpy as np


def mlp_kernel(x_ref,
               w1_ref, b1_ref,
               w2_ref, b2_ref,
               w3_ref, b3_ref,
               w4_ref, b4_ref,
               w5_ref, b5_ref,
               o_ref):
    """One batch tile: 5 fused matmuls, f32 accumulation, sigmoid output."""

    def layer(h, w_ref, b_ref, relu):
        # Cast activations to the weight dtype (bf16 on v6e/v7x path, no-op for
        # f32) so the MXU takes its native path; accumulate in f32.
        h = jnp.dot(h.astype(w_ref.dtype), w_ref[...],
                    preferred_element_type=jnp.float32) + b_ref[...]
        return jnp.maximum(h, 0.0) if relu else h

    h = x_ref[...]
    h = layer(h, w1_ref, b1_ref, relu=True)
    h = layer(h, w2_ref, b2_ref, relu=True)
    h = layer(h, w3_ref, b3_ref, relu=True)
    h = layer(h, w4_ref, b4_ref, relu=True)
    h = layer(h, w5_ref, b5_ref, relu=False)
    o_ref[...] = jax.nn.sigmoid(h)            # lane-dense (TB, 128) store


def _round_up(n, m):
    return ((n + m - 1) // m) * m


def _pad2d(a, shape):
    return jnp.pad(a, [(0, s - d) for d, s in zip(a.shape, shape)])


def mlp_forward(x, params, *, block_b=512, compute_dtype=jnp.float32,
                h4_pad=8, out_pad=128):
    """x: [B, in_dim] f32.  params: list of (w:[in,out] f32, b:[1,out] f32)."""
    (w1, b1), (w2, b2), (w3, b3), (w4, b4), (w5, b5) = params
    B, in_dim = x.shape
    out_dim = w5.shape[1]

    # --- zero-pad the narrow layers to lane/sublane-friendly widths ----------
    w4p = _pad2d(w4, (w4.shape[0], h4_pad))          # 16x7  -> 16x8
    b4p = _pad2d(b4, (1, h4_pad))
    w5p = _pad2d(w5, (h4_pad, out_pad))              # 7x1   -> 8x128
    b5p = _pad2d(b5, (1, out_pad))

    # --- batch tiling: multiple of 8 sublanes, capped at block_b -------------
    tb = min(block_b, _round_up(B, 8))
    b_pad = _round_up(B, tb)
    xp = jnp.pad(x, ((0, b_pad - B), (0, 0))).astype(compute_dtype)

    # Weights in the compute dtype (bf16 on v6e/v7x), biases stay f32 since
    # they are added to the f32 accumulator (v5e VPU/EUP have no bf16 anyway).
    ws = [w1.astype(compute_dtype), w2.astype(compute_dtype),
          w3.astype(compute_dtype), w4p.astype(compute_dtype),
          w5p.astype(compute_dtype)]
    bs = [b1, b2, b3, b4p, b5p]

    def resident(shape):
        # Same block for every grid step -> DMA'd once, stays VMEM-resident.
        return pl.BlockSpec(shape, lambda i: (0, 0))

    in_specs = [pl.BlockSpec((tb, in_dim), lambda i: (i, 0))]
    for w, b in zip(ws, bs):
        in_specs.append(resident(w.shape))
        in_specs.append(resident(b.shape))

    flops = 2 * b_pad * sum(w.shape[0] * w.shape[1] for w in ws)
    bytes_accessed = int(
        xp.size * xp.dtype.itemsize
        + sum(a.size * a.dtype.itemsize for a in ws + bs)
        + b_pad * out_pad * 4)

    out = pl.pallas_call(
        mlp_kernel,
        out_shape=jax.ShapeDtypeStruct((b_pad, out_pad), jnp.float32),
        grid=(b_pad // tb,),
        in_specs=in_specs,
        out_specs=pl.BlockSpec((tb, out_pad), lambda i: (i, 0)),
        compiler_params=pltpu.CompilerParams(
            dimension_semantics=("parallel",)),
        cost_estimate=pl.CostEstimate(
            flops=flops,
            transcendentals=b_pad * out_pad,
            bytes_accessed=bytes_accessed),
    )(xp, ws[0], bs[0], ws[1], bs[1], ws[2], bs[2], ws[3], bs[3], ws[4], bs[4])

    return out[:B, :out_dim]


def init_linear(key, fan_in, fan_out):
    # PyTorch nn.Linear default init: U(-1/sqrt(fan_in), 1/sqrt(fan_in))
    kw, kb = jax.random.split(key)
    bound = 1.0 / np.sqrt(fan_in)
    w = jax.random.uniform(kw, (fan_in, fan_out), jnp.float32, -bound, bound)
    b = jax.random.uniform(kb, (1, fan_out), jnp.float32, -bound, bound)
    return w, b


def reference_forward(x, params):
    h = x
    for i, (w, b) in enumerate(params):
        h = h @ w + b
        if i < len(params) - 1:
            h = jnp.maximum(h, 0.0)
    return jax.nn.sigmoid(h)


if __name__ == "__main__":
    input_dim = 30   # breast-cancer feature count
    output_dim = 1

    key = jax.random.PRNGKey(0)
    kx, kx2, k1, k2, k3, k4, k5 = jax.random.split(key, 7)

    dims = [(input_dim, 64), (64, 32), (32, 16), (16, 7), (7, output_dim)]
    keys = [k1, k2, k3, k4, k5]
    params = [init_linear(k, fi, fo) for k, (fi, fo) in zip(keys, dims)]

    # 1) small batch (matches original module usage), f32 path, tight tolerance
    x_small = jax.random.normal(kx, (8, input_dim), jnp.float32)
    out_small = jax.block_until_ready(mlp_forward(x_small, params))
    ref_small = reference_forward(x_small, params)
    np.testing.assert_allclose(np.asarray(out_small), np.asarray(ref_small),
                               rtol=1e-5, atol=1e-5)

    # 2) larger, non-tile-aligned batch exercising the batch grid
    #    (resident weights, "parallel" batch axis, batch padding)
    x_big = jax.random.normal(kx2, (400, input_dim), jnp.float32)
    out_big = jax.block_until_ready(mlp_forward(x_big, params, block_b=128))
    ref_big = reference_forward(x_big, params)
    np.testing.assert_allclose(np.asarray(out_big), np.asarray(ref_big),
                               rtol=1e-5, atol=1e-5)

    # 3) bf16 weights/activations + f32 accumulation (v6e/v7x MXU-native path)
    out_bf16 = jax.block_until_ready(
        mlp_forward(x_big, params, block_b=128, compute_dtype=jnp.bfloat16))
    np.testing.assert_allclose(np.asarray(out_bf16), np.asarray(ref_big),
                               rtol=5e-2, atol=5e-2)

    print("KERNEL_OK")
</pallas_src>

<mosaic_0001>
module attributes {stable_mosaic.version = 11 : i64} {
  func.func @mlp_kernel(%arg0: i32, %arg1: memref<8x30xf32, #tpu.memory_space<vmem>>, %arg2: memref<30x64xf32, #tpu.memory_space<vmem>>, %arg3: memref<1x64xf32, #tpu.memory_space<vmem>>, %arg4: memref<64x32xf32, #tpu.memory_space<vmem>>, %arg5: memref<1x32xf32, #tpu.memory_space<vmem>>, %arg6: memref<32x16xf32, #tpu.memory_space<vmem>>, %arg7: memref<1x16xf32, #tpu.memory_space<vmem>>, %arg8: memref<16x8xf32, #tpu.memory_space<vmem>>, %arg9: memref<1x8xf32, #tpu.memory_space<vmem>>, %arg10: memref<8x128xf32, #tpu.memory_space<vmem>>, %arg11: memref<1x128xf32, #tpu.memory_space<vmem>>, %arg12: memref<8x128xf32, #tpu.memory_space<vmem>>) attributes {dimension_semantics = [#tpu.dimension_semantics<parallel>], iteration_bounds = array<i64: 1>, scalar_prefetch = 0 : i64, scratch_operands = 0 : i64, tpu.core_type = #tpu.core_type<tc>, window_params = [{transform_indices = @transform_0, window_bounds = array<i64: 8, 30>}, {pipeline_mode = #tpu.pipeline_mode<synchronous>, transform_indices = @transform_1, window_bounds = array<i64: 30, 64>}, {pipeline_mode = #tpu.pipeline_mode<synchronous>, transform_indices = @transform_2, window_bounds = array<i64: 1, 64>}, {pipeline_mode = #tpu.pipeline_mode<synchronous>, transform_indices = @transform_3, window_bounds = array<i64: 64, 32>}, {pipeline_mode = #tpu.pipeline_mode<synchronous>, transform_indices = @transform_4, window_bounds = array<i64: 1, 32>}, {pipeline_mode = #tpu.pipeline_mode<synchronous>, transform_indices = @transform_5, window_bounds = array<i64: 32, 16>}, {pipeline_mode = #tpu.pipeline_mode<synchronous>, transform_indices = @transform_6, window_bounds = array<i64: 1, 16>}, {pipeline_mode = #tpu.pipeline_mode<synchronous>, transform_indices = @transform_7, window_bounds = array<i64: 16, 8>}, {pipeline_mode = #tpu.pipeline_mode<synchronous>, transform_indices = @transform_8, window_bounds = array<i64: 1, 8>}, {pipeline_mode = #tpu.pipeline_mode<synchronous>, transform_indices = @transform_9, window_bounds = array<i64: 8, 128>}, {pipeline_mode = #tpu.pipeline_mode<synchronous>, transform_indices = @transform_10, window_bounds = array<i64: 1, 128>}, {transform_indices = @transform_11, window_bounds = array<i64: 8, 128>}]} {
    %c0 = arith.constant 0 : index
    %c0_0 = arith.constant 0 : index
    %0 = vector.load %arg1[%c0, %c0_0] : memref<8x30xf32, #tpu.memory_space<vmem>>, vector<8x30xf32>
    %c0_1 = arith.constant 0 : index
    %c0_2 = arith.constant 0 : index
    %1 = vector.load %arg2[%c0_1, %c0_2] : memref<30x64xf32, #tpu.memory_space<vmem>>, vector<30x64xf32>
    %cst = arith.constant dense<0.000000e+00> : vector<8x64xf32>
    %2 = tpu.matmul %0, %1, %cst {dimension_numbers = #tpu.dot_dimension_numbers<[1], [0], [0], [1], [0, 0, 1, 1], [], []>} : vector<8x30xf32>, vector<30x64xf32>, vector<8x64xf32> -> vector<8x64xf32>
    %c0_3 = arith.constant 0 : index
    %c0_4 = arith.constant 0 : index
    %3 = vector.load %arg3[%c0_3, %c0_4] : memref<1x64xf32, #tpu.memory_space<vmem>>, vector<1x64xf32>
    %4 = vector.broadcast %3 : vector<1x64xf32> to vector<8x64xf32>
    %5 = arith.addf %2, %4 : vector<8x64xf32>
    %cst_5 = arith.constant 0.000000e+00 : f32
    %6 = vector.broadcast %cst_5 : f32 to vector<8x64xf32>
    %7 = arith.maximumf %5, %6 : vector<8x64xf32>
    %c0_6 = arith.constant 0 : index
    %c0_7 = arith.constant 0 : index
    %8 = vector.load %arg4[%c0_6, %c0_7] : memref<64x32xf32, #tpu.memory_space<vmem>>, vector<64x32xf32>
    %cst_8 = arith.constant dense<0.000000e+00> : vector<8x32xf32>
    %9 = tpu.matmul %7, %8, %cst_8 {dimension_numbers = #tpu.dot_dimension_numbers<[1], [0], [0], [1], [0, 0, 1, 1], [], []>} : vector<8x64xf32>, vector<64x32xf32>, vector<8x32xf32> -> vector<8x32xf32>
    %c0_9 = arith.constant 0 : index
    %c0_10 = arith.constant 0 : index
    %10 = vector.load %arg5[%c0_9, %c0_10] : memref<1x32xf32, #tpu.memory_space<vmem>>, vector<1x32xf32>
    %11 = vector.broadcast %10 : vector<1x32xf32> to vector<8x32xf32>
    %12 = arith.addf %9, %11 : vector<8x32xf32>
    %cst_11 = arith.constant 0.000000e+00 : f32
    %13 = vector.broadcast %cst_11 : f32 to vector<8x32xf32>
    %14 = arith.maximumf %12, %13 : vector<8x32xf32>
    %c0_12 = arith.constant 0 : index
    %c0_13 = arith.constant 0 : index
    %15 = vector.load %arg6[%c0_12, %c0_13] : memref<32x16xf32, #tpu.memory_space<vmem>>, vector<32x16xf32>
    %cst_14 = arith.constant dense<0.000000e+00> : vector<8x16xf32>
    %16 = tpu.matmul %14, %15, %cst_14 {dimension_numbers = #tpu.dot_dimension_numbers<[1], [0], [0], [1], [0, 0, 1, 1], [], []>} : vector<8x32xf32>, vector<32x16xf32>, vector<8x16xf32> -> vector<8x16xf32>
    %c0_15 = arith.constant 0 : index
    %c0_16 = arith.constant 0 : index
    %17 = vector.load %arg7[%c0_15, %c0_16] : memref<1x16xf32, #tpu.memory_space<vmem>>, vector<1x16xf32>
    %18 = vector.broadcast %17 : vector<1x16xf32> to vector<8x16xf32>
    %19 = arith.addf %16, %18 : vector<8x16xf32>
    %cst_17 = arith.constant 0.000000e+00 : f32
    %20 = vector.broadcast %cst_17 : f32 to vector<8x16xf32>
    %21 = arith.maximumf %19, %20 : vector<8x16xf32>
    %c0_18 = arith.constant 0 : index
    %c0_19 = arith.constant 0 : index
    %22 = vector.load %arg8[%c0_18, %c0_19] : memref<16x8xf32, #tpu.memory_space<vmem>>, vector<16x8xf32>
    %cst_20 = arith.constant dense<0.000000e+00> : vector<8x8xf32>
    %23 = tpu.matmul %21, %22, %cst_20 {dimension_numbers = #tpu.dot_dimension_numbers<[1], [0], [0], [1], [0, 0, 1, 1], [], []>} : vector<8x16xf32>, vector<16x8xf32>, vector<8x8xf32> -> vector<8x8xf32>
    %c0_21 = arith.constant 0 : index
    %c0_22 = arith.constant 0 : index
    %24 = vector.load %arg9[%c0_21, %c0_22] : memref<1x8xf32, #tpu.memory_space<vmem>>, vector<1x8xf32>
    %25 = vector.broadcast %24 : vector<1x8xf32> to vector<8x8xf32>
    %26 = arith.addf %23, %25 : vector<8x8xf32>
    %cst_23 = arith.constant 0.000000e+00 : f32
    %27 = vector.broadcast %cst_23 : f32 to vector<8x8xf32>
    %28 = arith.maximumf %26, %27 : vector<8x8xf32>
    %c0_24 = arith.constant 0 : index
    %c0_25 = arith.constant 0 : index
    %29 = vector.load %arg10[%c0_24, %c0_25] : memref<8x128xf32, #tpu.memory_space<vmem>>, vector<8x128xf32>
    %cst_26 = arith.constant dense<0.000000e+00> : vector<8x128xf32>
    %30 = tpu.matmul %28, %29, %cst_26 {dimension_numbers = #tpu.dot_dimension_numbers<[1], [0], [0], [1], [0, 0, 1, 1], [], []>} : vector<8x8xf32>, vector<8x128xf32>, vector<8x128xf32> -> vector<8x128xf32>
    %c0_27 = arith.constant 0 : index
    %c0_28 = arith.constant 0 : index
    %31 = vector.load %arg11[%c0_27, %c0_28] : memref<1x128xf32, #tpu.memory_space<vmem>>, vector<1x128xf32>
    %32 = vector.broadcast %31 : vector<1x128xf32> to vector<8x128xf32>
    %33 = arith.addf %30, %32 : vector<8x128xf32>
    %34 = arith.negf %33 : vector<8x128xf32>
    %35 = math.exp %34 : vector<8x128xf32>
    %cst_29 = arith.constant 1.000000e+00 : f32
    %36 = vector.broadcast %cst_29 : f32 to vector<8x128xf32>
    %37 = arith.addf %36, %35 : vector<8x128xf32>
    %38 = arith.divf %36, %37 : vector<8x128xf32>
    %c0_30 = arith.constant 0 : index
    %c0_31 = arith.constant 0 : index
    %39 = vector.load %arg12[%c0_30, %c0_31] : memref<8x128xf32, #tpu.memory_space<vmem>>, vector<8x128xf32>
    tpu.vector_store %arg12[%c0_30, %c0_31], %38 {strides = array<i32>} : memref<8x128xf32, #tpu.memory_space<vmem>>, vector<8x128xf32>,
    return
  }
  func.func @transform_0(%arg0: i32) -> (i32, i32) {
    %c0_i32 = arith.constant 0 : i32
    %c0_i32_0 = arith.constant 0 : i32
    return %arg0, %c0_i32 : i32, i32
  }
  func.func @transform_1(%arg0: i32) -> (i32, i32) {
    %c0_i32 = arith.constant 0 : i32
    %c0_i32_0 = arith.constant 0 : i32
    %c0_i32_1 = arith.constant 0 : i32
    return %c0_i32, %c0_i32_0 : i32, i32
  }
  func.func @transform_2(%arg0: i32) -> (i32, i32) {
    %c0_i32 = arith.constant 0 : i32
    %c0_i32_0 = arith.constant 0 : i32
    %c0_i32_1 = arith.constant 0 : i32
    return %c0_i32, %c0_i32_0 : i32, i32
  }
  func.func @transform_3(%arg0: i32) -> (i32, i32) {
    %c0_i32 = arith.constant 0 : i32
    %c0_i32_0 = arith.constant 0 : i32
    %c0_i32_1 = arith.constant 0 : i32
    return %c0_i32, %c0_i32_0 : i32, i32
  }
  func.func @transform_4(%arg0: i32) -> (i32, i32) {
    %c0_i32 = arith.constant 0 : i32
    %c0_i32_0 = arith.constant 0 : i32
    %c0_i32_1 = arith.constant 0 : i32
    return %c0_i32, %c0_i32_0 : i32, i32
  }
  func.func @transform_5(%arg0: i32) -> (i32, i32) {
    %c0_i32 = arith.constant 0 : i32
    %c0_i32_0 = arith.constant 0 : i32
    %c0_i32_1 = arith.constant 0 : i32
    return %c0_i32, %c0_i32_0 : i32, i32
  }
  func.func @transform_6(%arg0: i32) -> (i32, i32) {
    %c0_i32 = arith.constant 0 : i32
    %c0_i32_0 = arith.constant 0 : i32
    %c0_i32_1 = arith.constant 0 : i32
    return %c0_i32, %c0_i32_0 : i32, i32
  }
  func.func @transform_7(%arg0: i32) -> (i32, i32) {
    %c0_i32 = arith.constant 0 : i32
    %c0_i32_0 = arith.constant 0 : i32
    %c0_i32_1 = arith.constant 0 : i32
    return %c0_i32, %c0_i32_0 : i32, i32
  }
  func.func @transform_8(%arg0: i32) -> (i32, i32) {
    %c0_i32 = arith.constant 0 : i32
    %c0_i32_0 = arith.constant 0 : i32
    %c0_i32_1 = arith.constant 0 : i32
    return %c0_i32, %c0_i32_0 : i32, i32
  }
  func.func @transform_9(%arg0: i32) -> (i32, i32) {
    %c0_i32 = arith.constant 0 : i32
    %c0_i32_0 = arith.constant 0 : i32
    %c0_i32_1 = arith.constant 0 : i32
    return %c0_i32, %c0_i32_0 : i32, i32
  }
  func.func @transform_10(%arg0: i32) -> (i32, i32) {
    %c0_i32 = arith.constant 0 : i32
    %c0_i32_0 = arith.constant 0 : i32
    %c0_i32_1 = arith.constant 0 : i32
    return %c0_i32, %c0_i32_0 : i32, i32
  }
  func.func @transform_11(%arg0: i32) -> (i32, i32) {
    %c0_i32 = arith.constant 0 : i32
    %c0_i32_0 = arith.constant 0 : i32
    return %arg0, %c0_i32 : i32, i32
  }
}

</mosaic_0001>

<bundles_post_ra>
// kernel: tpu_custom_call.1
= control target key start
LH: loop header
LB: loop body
LE: loop exit
PB: predicated region body
PF: predicated region fallthrough
CT: control target
= control target key end

     0   :  { %vm55_vm0 = vcmask 1045504   ;;  %v611_v1 = vmov 0.0   ;;  %vm612_vm1 = vmmov 0   ;;  %s781_s0 = inlined_call_operand.vmem [shape: f32[8,30], index: 0, kind: input, shape index: {}]   ;;  %s782_s1 = inlined_call_operand.vmem [shape: f32[30,64], index: 1, kind: input, shape index: {}]   ;;  %s783_s2 = inlined_call_operand.vmem [shape: f32[1,64], index: 2, kind: input, shape index: {}]   ;;  %s784_s3 = inlined_call_operand.vmem [shape: f32[64,32], index: 3, kind: input, shape index: {}]   ;;  %s785_s4 = inlined_call_operand.vmem [shape: f32[1,32], index: 4, kind: input, shape index: {}]   ;;  %s786_s5 = inlined_call_operand.vmem [shape: f32[32,16], index: 5, kind: input, shape index: {}]   ;;  %s787_s6 = inlined_call_operand.vmem [shape: f32[1,16], index: 6, kind: input, shape index: {}]   ;;  %s788_s7 = inlined_call_operand.vmem [shape: f32[16,8], index: 7, kind: input, shape index: {}]   ;;  %s789_s8 = inlined_call_operand.vmem [shape: f32[1,8], index: 8, kind: input, shape index: {}]   ;;  %s790_s9 = inlined_call_operand.vmem [shape: f32[8,128], index: 9, kind: input, shape index: {}]   ;;  %s791_s10 = inlined_call_operand.vmem [shape: f32[1,128], index: 10, kind: input, shape index: {}]   ;;  %s792_s11 = inlined_call_operand.hbm [shape: f32[8,128], index: 11, kind: output, shape index: {}]  }
   0x1   :  { %v43_v0 = vld [vmem:[%s782_s1 + $0x18] sm:$0x3f]  ;;  %529 = vmatprep.subr.mxu0 %v611_v1  ;;  %v42_v2 = vld [vmem:[%s782_s1 + $0x10] sm:$0xff]  ;;  %540 = vmatprep.subr.mxu1 %v611_v1  ;;  %v41_v5 = vld [vmem:[%s782_s1 + $0x8] sm:$0xff] }
   0x2   :  { %v137_v3 = vld [vmem:[%s784_s3 + $0x38] sm:$0xff]  ;;  %530 = vmatpush3.msk.msra.mxu0 %vm55_vm0, %v43_v0  ;;  %537 = vmatprep.mubr.msk.f32.mxu0 %vm612_vm1, %v611_v1  ;;  %v136_v4 = vld [vmem:[%s784_s3 + $0x30] sm:$0xff] }
   0x3   :  { %531 = vmatprep.subr.mxu0 %v611_v1  ;;  %541 = vmatpush3.msra.mxu1 %v137_v3 }
   0x4   :  { %16 = vsyncpa [#allocation3], 0  ;;  %532 = vmatpush3.msra.mxu0 %v42_v2  ;;  %542 = vmatprep.subr.mxu1 %v611_v1  ;;  %v135_v6 = vld [vmem:[%s784_s3 + $0x28] sm:$0xff]  ;;  %v40_v7 = vld [vmem:[%s782_s1] sm:$0xff]  ;;  %vm51_vm2 = vcmask 244736   ;;  %vm145_vm3 = vcmask 523264  }
   0x5   :  { %533 = vmatprep.subr.mxu0 %v611_v1  ;;  %543 = vmatpush3.msra.mxu1 %v136_v4  ;;  %v39_v8 = vld [vmem:[%s781_s0] sm:$0xff]  ;;  %v133_v10 = vld [vmem:[%s784_s3 + $0x18] sm:$0xff]  ;;  %v132_v11 = vld [vmem:[%s784_s3 + $0x10] sm:$0xff]  ;;  %vm231_vm4 = vcmask 261120   ;;  %vm315_vm5 = vcmask 130048   ;;  %vm398_vm6 = vcmask 64512  }
   0x6   :  { %534 = vmatpush3.msra.mxu0 %v41_v5  ;;  %544 = vmatprep.subr.mxu1 %v611_v1  ;;  %v134_v9 = vld [vmem:[%s784_s3 + $0x20] sm:$0xff]  ;;  %v131_v12 = vld [vmem:[%s784_s3 + $0x8] sm:$0xff]  ;;  %v223_v14 = vld [vmem:[%s786_s5 + $0x18] sm:$0xff] }
   0x7   :  { %535 = vmatprep.subr.mxu0 %v611_v1  ;;  %545 = vmatpush3.msra.mxu1 %v135_v6  ;;  %v130_v13 = vld [vmem:[%s784_s3] sm:$0xff]  ;;  %v222_v20 = vld [vmem:[%s786_s5 + $0x10] sm:$0xff]  ;;  %v221_v21 = vld [vmem:[%s786_s5 + $0x8] sm:$0xff] }
   0x8   :  { %536 = vmatpush3.msra.mxu0 %v40_v7  ;;  %546 = vmatprep.subr.mxu1 %v611_v1  ;;  %v493_v15 = vld [vmem:[%s783_s2] ss:$0 sm:$0xff]  ;;  %v307_v28 = vld [vmem:[%s788_s7 + $0x8] sm:$0xff] }
   0x9   :  { %538 = vmatmul.mubr.msk.f32.vlgmr.msra.gmra.mxu0 %vm51_vm2, %v39_v8  ;;  %547 = vmatpush3.msra.mxu1 %v134_v9  ;;  %v220_v22 = vld [vmem:[%s786_s5] sm:$0xff] }
   0xa   :  { %548 = vmatprep.subr.mxu1 %v611_v1  ;;  %556 = vmatprep.mubr.msk.f32.mxu1 %vm612_vm1, %v611_v1  ;;  %v496_v23 = vld [vmem:[%s785_s4] ss:$0 sm:$0xff] }
   0xb   :  { %549 = vmatpush3.msra.mxu1 %v133_v10  ;;  %559 = vmatprep.subr.mxu0 %v611_v1  ;;  %v306_v29 = vld [vmem:[%s788_s7] sm:$0xff] }
   0xc   :  { %550 = vmatprep.subr.mxu1 %v611_v1  ;;  %567 = vmatprep.mubr.msk.f32.mxu0 %vm612_vm1, %v611_v1  ;;  %v498_v30 = vld [vmem:[%s787_s6] ss:$0 sm:$0xff] }
   0xd   :  { %551 = vmatpush3.msra.mxu1 %v132_v11  ;;  %560 = vmatpush3.msra.mxu0 %v223_v14  ;;  %v390_v35 = vld [vmem:[%s790_s9] sm:$0xff]  ;;  %s613_s9 = smov [#allocation2]  }
   0xe   :  { %552 = vmatprep.subr.mxu1 %v611_v1  ;;  %561 = vmatprep.subr.mxu0 %v611_v1  ;;  %v500_v36 = vld [vmem:[%s789_s8] ss:$0 sm:$0xff]  ;;  %s485_s8 = sshll.u32 %s613_s9, 4  ;;  %s486_s8 = int_to_ptr.vmem [resolvable:$true] %s485_s8 }
   0xf   :  { %553 = vmatpush3.msra.mxu1 %v131_v12  ;;  %562 = vmatpush3.msra.mxu0 %v222_v20  ;;  %v502_v41 = vld [vmem:[%s791_s10] ss:$0 sm:$0xff]  ;;  %s589_s19 = scalar_lea.vmem %s486_s8, 128  ;;  %p594_p1 = scmp.lt.s32.totalorder %s486_s8, %s486_s8 }
  0x10   :  { %554 = vmatprep.subr.mxu1 %v611_v1  ;;  %563 = vmatprep.subr.mxu0 %v611_v1  ;;  %p590_p0 = scmp.ne.s32.totalorder %s486_s8, %s589_s19  ;;  %p595_p2 = scmp.lt.s32.totalorder %s589_s19, %s589_s19 }
  0x11   :  { %555 = vmatpush3.msra.mxu1 %v130_v13  ;;  %564 = vmatpush3.msra.mxu0 %v221_v21 }
  0x12   :  { %577 = vmatprep.subr.mxu1 %v611_v1  ;;  %565 = vmatprep.subr.mxu0 %v611_v1  ;;  %p596_p3 = por %p595_p2, %p594_p1 }
  0x13   :  { %566 = vmatpush3.msra.mxu0 %v220_v22 }
  0x14   :  { %570 = vmatprep.subr.mxu0 %v611_v1  ;;  %p597_p4 = pnand %p596_p3, %p590_p0 }
  0xc9   :  { %v125_v16 = vpop.f32.mrf.mxu0 }
  0xca   :  { %v126_v17 = vadd.f32 %v493_v15, %v125_v16 }
  0xcb   :  { %v539_v18 = vpop.f32.mrf.mxu0 }
  0xcc   :  { %v129_v19 = vmax.f32 %v126_v17, 0.0 }
  0xce   :  { %557 = vmatmul.mubr.msk.f32.vlgmr.msra.gmra.mxu1 %vm145_vm3, %v129_v19 }
  0xcf   :  { %579 = vmatprep.mubr.msk.f32.mxu1 %vm612_vm1, %v611_v1  ;;  %578 = vmatpush3.msra.mxu1 %v390_v35 }
 0x18e   :  { %v215_v24 = vpop.f32.mrf.mxu1 }
 0x18f   :  { %v216_v25 = vadd.f32 %v496_v23, %v215_v24 }
 0x190   :  { %v558_v26 = vpop.f32.mrf.mxu1 }
 0x191   :  { %v219_v27 = vmax.f32 %v216_v25, 0.0 }
 0x193   :  { %568 = vmatmul.mubr.msk.f32.vlgmr.msra.gmra.mxu0 %vm231_vm4, %v219_v27 }
 0x194   :  { %574 = vmatprep.mubr.msk.f32.mxu0 %vm612_vm1, %v611_v1  ;;  %571 = vmatpush3.msra.mxu0 %v307_v28 }
 0x195   :  { %572 = vmatprep.subr.mxu0 %v611_v1 }
 0x196   :  { %573 = vmatpush3.msra.mxu0 %v306_v29 }
 0x253   :  { %v301_v31 = vpop.f32.mrf.mxu0 }
 0x254   :  { %v302_v32 = vadd.f32 %v498_v30, %v301_v31 }
 0x255   :  { %v569_v33 = vpop.f32.mrf.mxu0 }
 0x256   :  { %v305_v34 = vmax.f32 %v302_v32, 0.0 }
 0x258   :  { %575 = vmatmul.mubr.msk.f32.vlgmr.msra.gmra.mxu0 %vm315_vm5, %v305_v34 }
 0x318   :  { %v385_v37 = vpop.f32.mrf.mxu0 }
 0x319   :  { %v386_v38 = vadd.f32 %v500_v36, %v385_v37 }
 0x31a   :  { %v576_v39 = vpop.f32.mrf.mxu0 }
 0x31b   :  { %v389_v40 = vmax.f32 %v386_v38, 0.0 }
 0x31d   :  { %580 = vmatmul.mubr.msk.f32.vlgmr.msra.gmra.mxu1 %vm398_vm6, %v389_v40 }
 0x3dd   :  { %v468_v42 = vpop.f32.mrf.mxu1 }
 0x3de   :  { %v469_v43 = vadd.f32 %v502_v41, %v468_v42 }
 0x3df   :  { %v581_v44 = vpop.f32.mrf.mxu1 }
 0x3e0   :  { %v504_v45 = vmul.f32 -1.442695, %v469_v43 }
 0x3e2   :  { %585 = vpow2.f32 %v504_v45 }
 0x3ef   :  { %v586_v46 = vpop.eup %585 }
 0x3f0   :  { %v475_v47 = vadd.f32 1.0, %v586_v46 }
 0x3f2   :  { %587 = vrcp.f32 %v475_v47 }
 0x3ff   :  { %v588_v48 = vpop.eup %587 }
 0x400   :  { %478 = vst [vmem:[#allocation2] sm:$0xff] %v588_v48 }
 0x401   :  { %600 = shalt.err (!%p597_p4)
}
 0x402   :  { %488 = dma.vmem_to_hbm [thread:$0]  %s486_s8, 128, %s792_s11, [#allocation3]  }
 0x403   :  { %609 = dma.done.wait [#allocation3], 128  }
 0x404   :  { %610 = vsyncadd [#allocation3], 4294967168 }
 0x405   :  { %492 = vsyncpa [#allocation3], 1 }

</bundles_post_ra>
